<compile_context>
chip_gen: v7x
topology: tpu7x:2x2x1
jax: 0.10.0
libtpu: 0.0.40
codegen_flags: <defaults>
</compile_context>

<pallas_src>
import math

import jax
import jax.numpy as jnp
import numpy as np
from jax.experimental import pallas as pl
from jax.experimental.pallas import tpu as pltpu


def _linear_stack_kernel(x_ref, w_hbm, acts_ref, wbuf, sems):
    """x_ref:   (1, L) f32 in VMEM
    w_hbm:     (num_layers, L, L) f32, pre-transposed weights, left in HBM
    acts_ref:  (num_layers, L) f32 output (the hook buffer)
    wbuf:      VMEM (2, L, L) double buffer for streamed weights
    sems:      DMA semaphores (2,)
    """
    num_layers = acts_ref.shape[0]

    def fetch(layer, slot):
        pltpu.make_async_copy(w_hbm.at[layer], wbuf.at[slot], sems.at[slot]).start()

    # Prime the pipeline with layer 0's weights.
    fetch(0, 0)

    h = x_ref[...]  # (1, L) f32, carried in registers across the layer chain
    rows = []
    for i in range(num_layers):  # static unroll — num_layers is small & static
        slot = i & 1
        # Wait for layer i's weights, then immediately prefetch layer i+1 into
        # the other slot so the DMA overlaps this layer's matmul.
        pltpu.make_async_copy(w_hbm.at[i], wbuf.at[slot], sems.at[slot]).wait()
        if i + 1 < num_layers:
            fetch(i + 1, 1 - slot)
        # y = h @ W_i.T  (weights are pre-transposed in HBM, so no in-kernel .T)
        h = jnp.dot(h, wbuf[slot], preferred_element_type=jnp.float32)
        rows.append(h)

    # Single unmasked (num_layers, L) store instead of num_layers masked row stores.
    acts_ref[...] = jnp.concatenate(rows, axis=0).astype(acts_ref.dtype)


def prepare_weights(weights):
    """One-time setup: pre-transpose PyTorch-layout (out, in) weights so the
    kernel computes y = h @ W_t directly.  Do NOT call this per forward."""
    return jnp.transpose(weights, (0, 2, 1)).astype(jnp.float32)


@jax.jit
def linear_network_forward(x, weights_t):
    """x: (layer_width,) f32; weights_t: (num_layers, L, L) PRE-TRANSPOSED
    (from prepare_weights).

    Returns (out, activations): the nn.Sequential output and the buffer the
    forward hooks would have filled (activations[i] = output of layer i).
    """
    num_layers, L, _ = weights_t.shape
    x2d = x.reshape(1, L).astype(jnp.float32)

    activations = pl.pallas_call(
        _linear_stack_kernel,
        out_shape=jax.ShapeDtypeStruct((num_layers, L), jnp.float32),
        in_specs=[
            pl.BlockSpec(memory_space=pltpu.MemorySpace.VMEM),  # x, whole array
            pl.BlockSpec(memory_space=pl.ANY),                  # weights stay in HBM
        ],
        out_specs=pl.BlockSpec(memory_space=pltpu.MemorySpace.VMEM),
        scratch_shapes=[
            pltpu.VMEM((2, L, L), jnp.float32),     # weight double buffer
            pltpu.SemaphoreType.DMA((2,)),          # one DMA sem per slot
        ],
    )(x2d, weights_t)

    final = activations[num_layers - 1]  # Sequential output == last activation
    return final, activations


def init_weights(key, num_layers, layer_width, Cw):
    std = math.sqrt(Cw / layer_width)
    # PyTorch nn.Linear weight shape: (out_features, in_features)
    return std * jax.random.normal(
        key, (num_layers, layer_width, layer_width), dtype=jnp.float32
    )


if __name__ == "__main__":
    num_layers = 8
    layer_width = 128
    Cw = 2.0

    key = jax.random.PRNGKey(0)
    kw, kx = jax.random.split(key)
    weights = init_weights(kw, num_layers, layer_width, Cw)
    x = jax.random.normal(kx, (layer_width,), dtype=jnp.float32)

    # One-time setup (outside the forward hot path).
    weights_t = jax.block_until_ready(prepare_weights(weights))

    out, activations = linear_network_forward(x, weights_t)
    out = jax.block_until_ready(out)
    activations = jax.block_until_ready(activations)

    # Pure-JAX reference of the same forward pass (sequential y = h @ W.T).
    h = x
    ref_acts = []
    for i in range(num_layers):
        h = h @ weights[i].T
        ref_acts.append(h)
    ref_out = h
    ref_acts = jnp.stack(ref_acts)

    assert np.allclose(np.asarray(out), np.asarray(ref_out), rtol=1e-4, atol=1e-4)
    assert np.allclose(np.asarray(activations), np.asarray(ref_acts), rtol=1e-4, atol=1e-4)

    print("KERNEL_OK")
</pallas_src>

<mosaic_0001>
module attributes {stable_mosaic.version = 11 : i64} {
  func.func @_linear_stack_kernel(%arg0: memref<1x128xf32, #tpu.memory_space<vmem>>, %arg1: memref<8x128x128xf32, #tpu.memory_space<any>>, %arg2: memref<8x128xf32, #tpu.memory_space<vmem>>, %arg3: memref<2x128x128xf32, #tpu.memory_space<vmem>>, %arg4: memref<2x!tpu.dma_semaphore, #tpu.memory_space<semaphore_mem>>) attributes {dimension_semantics = [], scalar_prefetch = 0 : i64, scratch_operands = 2 : i64, tpu.core_type = #tpu.core_type<tc>} {
    %c0_i32 = arith.constant 0 : i32
    %c0_i32_0 = arith.constant 0 : i32
    %c0_i32_1 = arith.constant 0 : i32
    %c0_i32_2 = arith.constant 0 : i32
    %c0_i32_3 = arith.constant 0 : i32
    %0 = tpu.memref_slice %arg1[%c0_i32, %c0_i32_2, %c0_i32_3] : memref<8x128x128xf32, #tpu.memory_space<any>> -> memref<1x128x128xf32, #tpu.memory_space<any>>
    %1 = tpu.memref_squeeze %0 : memref<1x128x128xf32, #tpu.memory_space<any>> -> memref<128x128xf32, #tpu.memory_space<any>>
    %c0_i32_4 = arith.constant 0 : i32
    %c0_i32_5 = arith.constant 0 : i32
    %2 = tpu.memref_slice %arg3[%c0_i32_0, %c0_i32_4, %c0_i32_5] : memref<2x128x128xf32, #tpu.memory_space<vmem>> -> memref<1x128x128xf32, #tpu.memory_space<vmem>>
    %3 = tpu.memref_squeeze %2 : memref<1x128x128xf32, #tpu.memory_space<vmem>> -> memref<128x128xf32, #tpu.memory_space<vmem>>
    %4 = tpu.memref_slice %arg4[%c0_i32_1] : memref<2x!tpu.dma_semaphore, #tpu.memory_space<semaphore_mem>> -> memref<1x!tpu.dma_semaphore, #tpu.memory_space<semaphore_mem>>
    %5 = tpu.memref_squeeze %4 : memref<1x!tpu.dma_semaphore, #tpu.memory_space<semaphore_mem>> -> memref<!tpu.dma_semaphore, #tpu.memory_space<semaphore_mem>>
    tpu.enqueue_dma source(%1 : memref<128x128xf32, #tpu.memory_space<any>>) target(%3 : memref<128x128xf32, #tpu.memory_space<vmem>>) target_semaphore(%5 : memref<!tpu.dma_semaphore, #tpu.memory_space<semaphore_mem>>)
    %c0 = arith.constant 0 : index
    %c0_6 = arith.constant 0 : index
    %6 = vector.load %arg0[%c0, %c0_6] : memref<1x128xf32, #tpu.memory_space<vmem>>, vector<1x128xf32>
    %c0_i32_7 = arith.constant 0 : i32
    %c0_i32_8 = arith.constant 0 : i32
    %c0_i32_9 = arith.constant 0 : i32
    %c0_i32_10 = arith.constant 0 : i32
    %c0_i32_11 = arith.constant 0 : i32
    %7 = tpu.memref_slice %arg1[%c0_i32_7, %c0_i32_10, %c0_i32_11] : memref<8x128x128xf32, #tpu.memory_space<any>> -> memref<1x128x128xf32, #tpu.memory_space<any>>
    %8 = tpu.memref_squeeze %7 : memref<1x128x128xf32, #tpu.memory_space<any>> -> memref<128x128xf32, #tpu.memory_space<any>>
    %c0_i32_12 = arith.constant 0 : i32
    %c0_i32_13 = arith.constant 0 : i32
    %9 = tpu.memref_slice %arg3[%c0_i32_8, %c0_i32_12, %c0_i32_13] : memref<2x128x128xf32, #tpu.memory_space<vmem>> -> memref<1x128x128xf32, #tpu.memory_space<vmem>>
    %10 = tpu.memref_squeeze %9 : memref<1x128x128xf32, #tpu.memory_space<vmem>> -> memref<128x128xf32, #tpu.memory_space<vmem>>
    %11 = tpu.memref_slice %arg4[%c0_i32_9] : memref<2x!tpu.dma_semaphore, #tpu.memory_space<semaphore_mem>> -> memref<1x!tpu.dma_semaphore, #tpu.memory_space<semaphore_mem>>
    %12 = tpu.memref_squeeze %11 : memref<1x!tpu.dma_semaphore, #tpu.memory_space<semaphore_mem>> -> memref<!tpu.dma_semaphore, #tpu.memory_space<semaphore_mem>>
    tpu.wait_dma2 semaphore(%12 : memref<!tpu.dma_semaphore, #tpu.memory_space<semaphore_mem>>) src(%8 : memref<128x128xf32, #tpu.memory_space<any>>) dst(%10 : memref<128x128xf32, #tpu.memory_space<vmem>>)
    %c1_i32 = arith.constant 1 : i32
    %c1_i32_14 = arith.constant 1 : i32
    %c1_i32_15 = arith.constant 1 : i32
    %c0_i32_16 = arith.constant 0 : i32
    %c0_i32_17 = arith.constant 0 : i32
    %13 = tpu.memref_slice %arg1[%c1_i32, %c0_i32_16, %c0_i32_17] : memref<8x128x128xf32, #tpu.memory_space<any>> -> memref<1x128x128xf32, #tpu.memory_space<any>>
    %14 = tpu.memref_squeeze %13 : memref<1x128x128xf32, #tpu.memory_space<any>> -> memref<128x128xf32, #tpu.memory_space<any>>
    %c0_i32_18 = arith.constant 0 : i32
    %c0_i32_19 = arith.constant 0 : i32
    %15 = tpu.memref_slice %arg3[%c1_i32_14, %c0_i32_18, %c0_i32_19] : memref<2x128x128xf32, #tpu.memory_space<vmem>> -> memref<1x128x128xf32, #tpu.memory_space<vmem>>
    %16 = tpu.memref_squeeze %15 : memref<1x128x128xf32, #tpu.memory_space<vmem>> -> memref<128x128xf32, #tpu.memory_space<vmem>>
    %17 = tpu.memref_slice %arg4[%c1_i32_15] : memref<2x!tpu.dma_semaphore, #tpu.memory_space<semaphore_mem>> -> memref<1x!tpu.dma_semaphore, #tpu.memory_space<semaphore_mem>>
    %18 = tpu.memref_squeeze %17 : memref<1x!tpu.dma_semaphore, #tpu.memory_space<semaphore_mem>> -> memref<!tpu.dma_semaphore, #tpu.memory_space<semaphore_mem>>
    tpu.enqueue_dma source(%14 : memref<128x128xf32, #tpu.memory_space<any>>) target(%16 : memref<128x128xf32, #tpu.memory_space<vmem>>) target_semaphore(%18 : memref<!tpu.dma_semaphore, #tpu.memory_space<semaphore_mem>>)
    %c0_20 = arith.constant 0 : index
    %c0_21 = arith.constant 0 : index
    %c0_22 = arith.constant 0 : index
    %19 = vector.load %arg3[%c0_20, %c0_21, %c0_22] : memref<2x128x128xf32, #tpu.memory_space<vmem>>, vector<1x128x128xf32>
    %20 = vector.shape_cast %19 : vector<1x128x128xf32> to vector<128x128xf32>
    %cst = arith.constant dense<0.000000e+00> : vector<1x128xf32>
    %21 = tpu.matmul %6, %20, %cst {dimension_numbers = #tpu.dot_dimension_numbers<[1], [0], [0], [1], [0, 0, 1, 1], [], []>} : vector<1x128xf32>, vector<128x128xf32>, vector<1x128xf32> -> vector<1x128xf32>
    %c1_i32_23 = arith.constant 1 : i32
    %c1_i32_24 = arith.constant 1 : i32
    %c1_i32_25 = arith.constant 1 : i32
    %c0_i32_26 = arith.constant 0 : i32
    %c0_i32_27 = arith.constant 0 : i32
    %22 = tpu.memref_slice %arg1[%c1_i32_23, %c0_i32_26, %c0_i32_27] : memref<8x128x128xf32, #tpu.memory_space<any>> -> memref<1x128x128xf32, #tpu.memory_space<any>>
    %23 = tpu.memref_squeeze %22 : memref<1x128x128xf32, #tpu.memory_space<any>> -> memref<128x128xf32, #tpu.memory_space<any>>
    %c0_i32_28 = arith.constant 0 : i32
    %c0_i32_29 = arith.constant 0 : i32
    %24 = tpu.memref_slice %arg3[%c1_i32_24, %c0_i32_28, %c0_i32_29] : memref<2x128x128xf32, #tpu.memory_space<vmem>> -> memref<1x128x128xf32, #tpu.memory_space<vmem>>
    %25 = tpu.memref_squeeze %24 : memref<1x128x128xf32, #tpu.memory_space<vmem>> -> memref<128x128xf32, #tpu.memory_space<vmem>>
    %26 = tpu.memref_slice %arg4[%c1_i32_25] : memref<2x!tpu.dma_semaphore, #tpu.memory_space<semaphore_mem>> -> memref<1x!tpu.dma_semaphore, #tpu.memory_space<semaphore_mem>>
    %27 = tpu.memref_squeeze %26 : memref<1x!tpu.dma_semaphore, #tpu.memory_space<semaphore_mem>> -> memref<!tpu.dma_semaphore, #tpu.memory_space<semaphore_mem>>
    tpu.wait_dma2 semaphore(%27 : memref<!tpu.dma_semaphore, #tpu.memory_space<semaphore_mem>>) src(%23 : memref<128x128xf32, #tpu.memory_space<any>>) dst(%25 : memref<128x128xf32, #tpu.memory_space<vmem>>)
    %c2_i32 = arith.constant 2 : i32
    %c0_i32_30 = arith.constant 0 : i32
    %c0_i32_31 = arith.constant 0 : i32
    %c0_i32_32 = arith.constant 0 : i32
    %c0_i32_33 = arith.constant 0 : i32
    %28 = tpu.memref_slice %arg1[%c2_i32, %c0_i32_32, %c0_i32_33] : memref<8x128x128xf32, #tpu.memory_space<any>> -> memref<1x128x128xf32, #tpu.memory_space<any>>
    %29 = tpu.memref_squeeze %28 : memref<1x128x128xf32, #tpu.memory_space<any>> -> memref<128x128xf32, #tpu.memory_space<any>>
    %c0_i32_34 = arith.constant 0 : i32
    %c0_i32_35 = arith.constant 0 : i32
    %30 = tpu.memref_slice %arg3[%c0_i32_30, %c0_i32_34, %c0_i32_35] : memref<2x128x128xf32, #tpu.memory_space<vmem>> -> memref<1x128x128xf32, #tpu.memory_space<vmem>>
    %31 = tpu.memref_squeeze %30 : memref<1x128x128xf32, #tpu.memory_space<vmem>> -> memref<128x128xf32, #tpu.memory_space<vmem>>
    %32 = tpu.memref_slice %arg4[%c0_i32_31] : memref<2x!tpu.dma_semaphore, #tpu.memory_space<semaphore_mem>> -> memref<1x!tpu.dma_semaphore, #tpu.memory_space<semaphore_mem>>
    %33 = tpu.memref_squeeze %32 : memref<1x!tpu.dma_semaphore, #tpu.memory_space<semaphore_mem>> -> memref<!tpu.dma_semaphore, #tpu.memory_space<semaphore_mem>>
    tpu.enqueue_dma source(%29 : memref<128x128xf32, #tpu.memory_space<any>>) target(%31 : memref<128x128xf32, #tpu.memory_space<vmem>>) target_semaphore(%33 : memref<!tpu.dma_semaphore, #tpu.memory_space<semaphore_mem>>)
    %c1 = arith.constant 1 : index
    %c0_36 = arith.constant 0 : index
    %c0_37 = arith.constant 0 : index
    %34 = vector.load %arg3[%c1, %c0_36, %c0_37] : memref<2x128x128xf32, #tpu.memory_space<vmem>>, vector<1x128x128xf32>
    %35 = vector.shape_cast %34 : vector<1x128x128xf32> to vector<128x128xf32>
    %cst_38 = arith.constant dense<0.000000e+00> : vector<1x128xf32>
    %36 = tpu.matmul %21, %35, %cst_38 {dimension_numbers = #tpu.dot_dimension_numbers<[1], [0], [0], [1], [0, 0, 1, 1], [], []>} : vector<1x128xf32>, vector<128x128xf32>, vector<1x128xf32> -> vector<1x128xf32>
    %c2_i32_39 = arith.constant 2 : i32
    %c0_i32_40 = arith.constant 0 : i32
    %c0_i32_41 = arith.constant 0 : i32
    %c0_i32_42 = arith.constant 0 : i32
    %c0_i32_43 = arith.constant 0 : i32
    %37 = tpu.memref_slice %arg1[%c2_i32_39, %c0_i32_42, %c0_i32_43] : memref<8x128x128xf32, #tpu.memory_space<any>> -> memref<1x128x128xf32, #tpu.memory_space<any>>
    %38 = tpu.memref_squeeze %37 : memref<1x128x128xf32, #tpu.memory_space<any>> -> memref<128x128xf32, #tpu.memory_space<any>>
    %c0_i32_44 = arith.constant 0 : i32
    %c0_i32_45 = arith.constant 0 : i32
    %39 = tpu.memref_slice %arg3[%c0_i32_40, %c0_i32_44, %c0_i32_45] : memref<2x128x128xf32, #tpu.memory_space<vmem>> -> memref<1x128x128xf32, #tpu.memory_space<vmem>>
    %40 = tpu.memref_squeeze %39 : memref<1x128x128xf32, #tpu.memory_space<vmem>> -> memref<128x128xf32, #tpu.memory_space<vmem>>
    %41 = tpu.memref_slice %arg4[%c0_i32_41] : memref<2x!tpu.dma_semaphore, #tpu.memory_space<semaphore_mem>> -> memref<1x!tpu.dma_semaphore, #tpu.memory_space<semaphore_mem>>
    %42 = tpu.memref_squeeze %41 : memref<1x!tpu.dma_semaphore, #tpu.memory_space<semaphore_mem>> -> memref<!tpu.dma_semaphore, #tpu.memory_space<semaphore_mem>>
    tpu.wait_dma2 semaphore(%42 : memref<!tpu.dma_semaphore, #tpu.memory_space<semaphore_mem>>) src(%38 : memref<128x128xf32, #tpu.memory_space<any>>) dst(%40 : memref<128x128xf32, #tpu.memory_space<vmem>>)
    %c3_i32 = arith.constant 3 : i32
    %c1_i32_46 = arith.constant 1 : i32
    %c1_i32_47 = arith.constant 1 : i32
    %c0_i32_48 = arith.constant 0 : i32
    %c0_i32_49 = arith.constant 0 : i32
    %43 = tpu.memref_slice %arg1[%c3_i32, %c0_i32_48, %c0_i32_49] : memref<8x128x128xf32, #tpu.memory_space<any>> -> memref<1x128x128xf32, #tpu.memory_space<any>>
    %44 = tpu.memref_squeeze %43 : memref<1x128x128xf32, #tpu.memory_space<any>> -> memref<128x128xf32, #tpu.memory_space<any>>
    %c0_i32_50 = arith.constant 0 : i32
    %c0_i32_51 = arith.constant 0 : i32
    %45 = tpu.memref_slice %arg3[%c1_i32_46, %c0_i32_50, %c0_i32_51] : memref<2x128x128xf32, #tpu.memory_space<vmem>> -> memref<1x128x128xf32, #tpu.memory_space<vmem>>
    %46 = tpu.memref_squeeze %45 : memref<1x128x128xf32, #tpu.memory_space<vmem>> -> memref<128x128xf32, #tpu.memory_space<vmem>>
    %47 = tpu.memref_slice %arg4[%c1_i32_47] : memref<2x!tpu.dma_semaphore, #tpu.memory_space<semaphore_mem>> -> memref<1x!tpu.dma_semaphore, #tpu.memory_space<semaphore_mem>>
    %48 = tpu.memref_squeeze %47 : memref<1x!tpu.dma_semaphore, #tpu.memory_space<semaphore_mem>> -> memref<!tpu.dma_semaphore, #tpu.memory_space<semaphore_mem>>
    tpu.enqueue_dma source(%44 : memref<128x128xf32, #tpu.memory_space<any>>) target(%46 : memref<128x128xf32, #tpu.memory_space<vmem>>) target_semaphore(%48 : memref<!tpu.dma_semaphore, #tpu.memory_space<semaphore_mem>>)
    %c0_52 = arith.constant 0 : index
    %c0_53 = arith.constant 0 : index
    %c0_54 = arith.constant 0 : index
    %49 = vector.load %arg3[%c0_52, %c0_53, %c0_54] : memref<2x128x128xf32, #tpu.memory_space<vmem>>, vector<1x128x128xf32>
    %50 = vector.shape_cast %49 : vector<1x128x128xf32> to vector<128x128xf32>
    %cst_55 = arith.constant dense<0.000000e+00> : vector<1x128xf32>
    %51 = tpu.matmul %36, %50, %cst_55 {dimension_numbers = #tpu.dot_dimension_numbers<[1], [0], [0], [1], [0, 0, 1, 1], [], []>} : vector<1x128xf32>, vector<128x128xf32>, vector<1x128xf32> -> vector<1x128xf32>
    %c3_i32_56 = arith.constant 3 : i32
    %c1_i32_57 = arith.constant 1 : i32
    %c1_i32_58 = arith.constant 1 : i32
    %c0_i32_59 = arith.constant 0 : i32
    %c0_i32_60 = arith.constant 0 : i32
    %52 = tpu.memref_slice %arg1[%c3_i32_56, %c0_i32_59, %c0_i32_60] : memref<8x128x128xf32, #tpu.memory_space<any>> -> memref<1x128x128xf32, #tpu.memory_space<any>>
    %53 = tpu.memref_squeeze %52 : memref<1x128x128xf32, #tpu.memory_space<any>> -> memref<128x128xf32, #tpu.memory_space<any>>
    %c0_i32_61 = arith.constant 0 : i32
    %c0_i32_62 = arith.constant 0 : i32
    %54 = tpu.memref_slice %arg3[%c1_i32_57, %c0_i32_61, %c0_i32_62] : memref<2x128x128xf32, #tpu.memory_space<vmem>> -> memref<1x128x128xf32, #tpu.memory_space<vmem>>
    %55 = tpu.memref_squeeze %54 : memref<1x128x128xf32, #tpu.memory_space<vmem>> -> memref<128x128xf32, #tpu.memory_space<vmem>>
    %56 = tpu.memref_slice %arg4[%c1_i32_58] : memref<2x!tpu.dma_semaphore, #tpu.memory_space<semaphore_mem>> -> memref<1x!tpu.dma_semaphore, #tpu.memory_space<semaphore_mem>>
    %57 = tpu.memref_squeeze %56 : memref<1x!tpu.dma_semaphore, #tpu.memory_space<semaphore_mem>> -> memref<!tpu.dma_semaphore, #tpu.memory_space<semaphore_mem>>
    tpu.wait_dma2 semaphore(%57 : memref<!tpu.dma_semaphore, #tpu.memory_space<semaphore_mem>>) src(%53 : memref<128x128xf32, #tpu.memory_space<any>>) dst(%55 : memref<128x128xf32, #tpu.memory_space<vmem>>)
    %c4_i32 = arith.constant 4 : i32
    %c0_i32_63 = arith.constant 0 : i32
    %c0_i32_64 = arith.constant 0 : i32
    %c0_i32_65 = arith.constant 0 : i32
    %c0_i32_66 = arith.constant 0 : i32
    %58 = tpu.memref_slice %arg1[%c4_i32, %c0_i32_65, %c0_i32_66] : memref<8x128x128xf32, #tpu.memory_space<any>> -> memref<1x128x128xf32, #tpu.memory_space<any>>
    %59 = tpu.memref_squeeze %58 : memref<1x128x128xf32, #tpu.memory_space<any>> -> memref<128x128xf32, #tpu.memory_space<any>>
    %c0_i32_67 = arith.constant 0 : i32
    %c0_i32_68 = arith.constant 0 : i32
    %60 = tpu.memref_slice %arg3[%c0_i32_63, %c0_i32_67, %c0_i32_68] : memref<2x128x128xf32, #tpu.memory_space<vmem>> -> memref<1x128x128xf32, #tpu.memory_space<vmem>>
    %61 = tpu.memref_squeeze %60 : memref<1x128x128xf32, #tpu.memory_space<vmem>> -> memref<128x128xf32, #tpu.memory_space<vmem>>
    %62 = tpu.memref_slice %arg4[%c0_i32_64] : memref<2x!tpu.dma_semaphore, #tpu.memory_space<semaphore_mem>> -> memref<1x!tpu.dma_semaphore, #tpu.memory_space<semaphore_mem>>
    %63 = tpu.memref_squeeze %62 : memref<1x!tpu.dma_semaphore, #tpu.memory_space<semaphore_mem>> -> memref<!tpu.dma_semaphore, #tpu.memory_space<semaphore_mem>>
    tpu.enqueue_dma source(%59 : memref<128x128xf32, #tpu.memory_space<any>>) target(%61 : memref<128x128xf32, #tpu.memory_space<vmem>>) target_semaphore(%63 : memref<!tpu.dma_semaphore, #tpu.memory_space<semaphore_mem>>)
    %c1_69 = arith.constant 1 : index
    %c0_70 = arith.constant 0 : index
    %c0_71 = arith.constant 0 : index
    %64 = vector.load %arg3[%c1_69, %c0_70, %c0_71] : memref<2x128x128xf32, #tpu.memory_space<vmem>>, vector<1x128x128xf32>
    %65 = vector.shape_cast %64 : vector<1x128x128xf32> to vector<128x128xf32>
    %cst_72 = arith.constant dense<0.000000e+00> : vector<1x128xf32>
    %66 = tpu.matmul %51, %65, %cst_72 {dimension_numbers = #tpu.dot_dimension_numbers<[1], [0], [0], [1], [0, 0, 1, 1], [], []>} : vector<1x128xf32>, vector<128x128xf32>, vector<1x128xf32> -> vector<1x128xf32>
    %c4_i32_73 = arith.constant 4 : i32
    %c0_i32_74 = arith.constant 0 : i32
    %c0_i32_75 = arith.constant 0 : i32
    %c0_i32_76 = arith.constant 0 : i32
    %c0_i32_77 = arith.constant 0 : i32
    %67 = tpu.memref_slice %arg1[%c4_i32_73, %c0_i32_76, %c0_i32_77] : memref<8x128x128xf32, #tpu.memory_space<any>> -> memref<1x128x128xf32, #tpu.memory_space<any>>
    %68 = tpu.memref_squeeze %67 : memref<1x128x128xf32, #tpu.memory_space<any>> -> memref<128x128xf32, #tpu.memory_space<any>>
    %c0_i32_78 = arith.constant 0 : i32
    %c0_i32_79 = arith.constant 0 : i32
    %69 = tpu.memref_slice %arg3[%c0_i32_74, %c0_i32_78, %c0_i32_79] : memref<2x128x128xf32, #tpu.memory_space<vmem>> -> memref<1x128x128xf32, #tpu.memory_space<vmem>>
    %70 = tpu.memref_squeeze %69 : memref<1x128x128xf32, #tpu.memory_space<vmem>> -> memref<128x128xf32, #tpu.memory_space<vmem>>
    %71 = tpu.memref_slice %arg4[%c0_i32_75] : memref<2x!tpu.dma_semaphore, #tpu.memory_space<semaphore_mem>> -> memref<1x!tpu.dma_semaphore, #tpu.memory_space<semaphore_mem>>
    %72 = tpu.memref_squeeze %71 : memref<1x!tpu.dma_semaphore, #tpu.memory_space<semaphore_mem>> -> memref<!tpu.dma_semaphore, #tpu.memory_space<semaphore_mem>>
    tpu.wait_dma2 semaphore(%72 : memref<!tpu.dma_semaphore, #tpu.memory_space<semaphore_mem>>) src(%68 : memref<128x128xf32, #tpu.memory_space<any>>) dst(%70 : memref<128x128xf32, #tpu.memory_space<vmem>>)
    %c5_i32 = arith.constant 5 : i32
    %c1_i32_80 = arith.constant 1 : i32
    %c1_i32_81 = arith.constant 1 : i32
    %c0_i32_82 = arith.constant 0 : i32
    %c0_i32_83 = arith.constant 0 : i32
    %73 = tpu.memref_slice %arg1[%c5_i32, %c0_i32_82, %c0_i32_83] : memref<8x128x128xf32, #tpu.memory_space<any>> -> memref<1x128x128xf32, #tpu.memory_space<any>>
    %74 = tpu.memref_squeeze %73 : memref<1x128x128xf32, #tpu.memory_space<any>> -> memref<128x128xf32, #tpu.memory_space<any>>
    %c0_i32_84 = arith.constant 0 : i32
    %c0_i32_85 = arith.constant 0 : i32
    %75 = tpu.memref_slice %arg3[%c1_i32_80, %c0_i32_84, %c0_i32_85] : memref<2x128x128xf32, #tpu.memory_space<vmem>> -> memref<1x128x128xf32, #tpu.memory_space<vmem>>
    %76 = tpu.memref_squeeze %75 : memref<1x128x128xf32, #tpu.memory_space<vmem>> -> memref<128x128xf32, #tpu.memory_space<vmem>>
    %77 = tpu.memref_slice %arg4[%c1_i32_81] : memref<2x!tpu.dma_semaphore, #tpu.memory_space<semaphore_mem>> -> memref<1x!tpu.dma_semaphore, #tpu.memory_space<semaphore_mem>>
    %78 = tpu.memref_squeeze %77 : memref<1x!tpu.dma_semaphore, #tpu.memory_space<semaphore_mem>> -> memref<!tpu.dma_semaphore, #tpu.memory_space<semaphore_mem>>
    tpu.enqueue_dma source(%74 : memref<128x128xf32, #tpu.memory_space<any>>) target(%76 : memref<128x128xf32, #tpu.memory_space<vmem>>) target_semaphore(%78 : memref<!tpu.dma_semaphore, #tpu.memory_space<semaphore_mem>>)
    %c0_86 = arith.constant 0 : index
    %c0_87 = arith.constant 0 : index
    %c0_88 = arith.constant 0 : index
    %79 = vector.load %arg3[%c0_86, %c0_87, %c0_88] : memref<2x128x128xf32, #tpu.memory_space<vmem>>, vector<1x128x128xf32>
    %80 = vector.shape_cast %79 : vector<1x128x128xf32> to vector<128x128xf32>
    %cst_89 = arith.constant dense<0.000000e+00> : vector<1x128xf32>
    %81 = tpu.matmul %66, %80, %cst_89 {dimension_numbers = #tpu.dot_dimension_numbers<[1], [0], [0], [1], [0, 0, 1, 1], [], []>} : vector<1x128xf32>, vector<128x128xf32>, vector<1x128xf32> -> vector<1x128xf32>
    %c5_i32_90 = arith.constant 5 : i32
    %c1_i32_91 = arith.constant 1 : i32
    %c1_i32_92 = arith.constant 1 : i32
    %c0_i32_93 = arith.constant 0 : i32
    %c0_i32_94 = arith.constant 0 : i32
    %82 = tpu.memref_slice %arg1[%c5_i32_90, %c0_i32_93, %c0_i32_94] : memref<8x128x128xf32, #tpu.memory_space<any>> -> memref<1x128x128xf32, #tpu.memory_space<any>>
    %83 = tpu.memref_squeeze %82 : memref<1x128x128xf32, #tpu.memory_space<any>> -> memref<128x128xf32, #tpu.memory_space<any>>
    %c0_i32_95 = arith.constant 0 : i32
    %c0_i32_96 = arith.constant 0 : i32
    %84 = tpu.memref_slice %arg3[%c1_i32_91, %c0_i32_95, %c0_i32_96] : memref<2x128x128xf32, #tpu.memory_space<vmem>> -> memref<1x128x128xf32, #tpu.memory_space<vmem>>
    %85 = tpu.memref_squeeze %84 : memref<1x128x128xf32, #tpu.memory_space<vmem>> -> memref<128x128xf32, #tpu.memory_space<vmem>>
    %86 = tpu.memref_slice %arg4[%c1_i32_92] : memref<2x!tpu.dma_semaphore, #tpu.memory_space<semaphore_mem>> -> memref<1x!tpu.dma_semaphore, #tpu.memory_space<semaphore_mem>>
    %87 = tpu.memref_squeeze %86 : memref<1x!tpu.dma_semaphore, #tpu.memory_space<semaphore_mem>> -> memref<!tpu.dma_semaphore, #tpu.memory_space<semaphore_mem>>
    tpu.wait_dma2 semaphore(%87 : memref<!tpu.dma_semaphore, #tpu.memory_space<semaphore_mem>>) src(%83 : memref<128x128xf32, #tpu.memory_space<any>>) dst(%85 : memref<128x128xf32, #tpu.memory_space<vmem>>)
    %c6_i32 = arith.constant 6 : i32
    %c0_i32_97 = arith.constant 0 : i32
    %c0_i32_98 = arith.constant 0 : i32
    %c0_i32_99 = arith.constant 0 : i32
    %c0_i32_100 = arith.constant 0 : i32
    %88 = tpu.memref_slice %arg1[%c6_i32, %c0_i32_99, %c0_i32_100] : memref<8x128x128xf32, #tpu.memory_space<any>> -> memref<1x128x128xf32, #tpu.memory_space<any>>
    %89 = tpu.memref_squeeze %88 : memref<1x128x128xf32, #tpu.memory_space<any>> -> memref<128x128xf32, #tpu.memory_space<any>>
    %c0_i32_101 = arith.constant 0 : i32
    %c0_i32_102 = arith.constant 0 : i32
    %90 = tpu.memref_slice %arg3[%c0_i32_97, %c0_i32_101, %c0_i32_102] : memref<2x128x128xf32, #tpu.memory_space<vmem>> -> memref<1x128x128xf32, #tpu.memory_space<vmem>>
    %91 = tpu.memref_squeeze %90 : memref<1x128x128xf32, #tpu.memory_space<vmem>> -> memref<128x128xf32, #tpu.memory_space<vmem>>
    %92 = tpu.memref_slice %arg4[%c0_i32_98] : memref<2x!tpu.dma_semaphore, #tpu.memory_space<semaphore_mem>> -> memref<1x!tpu.dma_semaphore, #tpu.memory_space<semaphore_mem>>
    %93 = tpu.memref_squeeze %92 : memref<1x!tpu.dma_semaphore, #tpu.memory_space<semaphore_mem>> -> memref<!tpu.dma_semaphore, #tpu.memory_space<semaphore_mem>>
    tpu.enqueue_dma source(%89 : memref<128x128xf32, #tpu.memory_space<any>>) target(%91 : memref<128x128xf32, #tpu.memory_space<vmem>>) target_semaphore(%93 : memref<!tpu.dma_semaphore, #tpu.memory_space<semaphore_mem>>)
    %c1_103 = arith.constant 1 : index
    %c0_104 = arith.constant 0 : index
    %c0_105 = arith.constant 0 : index
    %94 = vector.load %arg3[%c1_103, %c0_104, %c0_105] : memref<2x128x128xf32, #tpu.memory_space<vmem>>, vector<1x128x128xf32>
    %95 = vector.shape_cast %94 : vector<1x128x128xf32> to vector<128x128xf32>
    %cst_106 = arith.constant dense<0.000000e+00> : vector<1x128xf32>
    %96 = tpu.matmul %81, %95, %cst_106 {dimension_numbers = #tpu.dot_dimension_numbers<[1], [0], [0], [1], [0, 0, 1, 1], [], []>} : vector<1x128xf32>, vector<128x128xf32>, vector<1x128xf32> -> vector<1x128xf32>
    %c6_i32_107 = arith.constant 6 : i32
    %c0_i32_108 = arith.constant 0 : i32
    %c0_i32_109 = arith.constant 0 : i32
    %c0_i32_110 = arith.constant 0 : i32
    %c0_i32_111 = arith.constant 0 : i32
    %97 = tpu.memref_slice %arg1[%c6_i32_107, %c0_i32_110, %c0_i32_111] : memref<8x128x128xf32, #tpu.memory_space<any>> -> memref<1x128x128xf32, #tpu.memory_space<any>>
    %98 = tpu.memref_squeeze %97 : memref<1x128x128xf32, #tpu.memory_space<any>> -> memref<128x128xf32, #tpu.memory_space<any>>
    %c0_i32_112 = arith.constant 0 : i32
    %c0_i32_113 = arith.constant 0 : i32
    %99 = tpu.memref_slice %arg3[%c0_i32_108, %c0_i32_112, %c0_i32_113] : memref<2x128x128xf32, #tpu.memory_space<vmem>> -> memref<1x128x128xf32, #tpu.memory_space<vmem>>
    %100 = tpu.memref_squeeze %99 : memref<1x128x128xf32, #tpu.memory_space<vmem>> -> memref<128x128xf32, #tpu.memory_space<vmem>>
    %101 = tpu.memref_slice %arg4[%c0_i32_109] : memref<2x!tpu.dma_semaphore, #tpu.memory_space<semaphore_mem>> -> memref<1x!tpu.dma_semaphore, #tpu.memory_space<semaphore_mem>>
    %102 = tpu.memref_squeeze %101 : memref<1x!tpu.dma_semaphore, #tpu.memory_space<semaphore_mem>> -> memref<!tpu.dma_semaphore, #tpu.memory_space<semaphore_mem>>
    tpu.wait_dma2 semaphore(%102 : memref<!tpu.dma_semaphore, #tpu.memory_space<semaphore_mem>>) src(%98 : memref<128x128xf32, #tpu.memory_space<any>>) dst(%100 : memref<128x128xf32, #tpu.memory_space<vmem>>)
    %c7_i32 = arith.constant 7 : i32
    %c1_i32_114 = arith.constant 1 : i32
    %c1_i32_115 = arith.constant 1 : i32
    %c0_i32_116 = arith.constant 0 : i32
    %c0_i32_117 = arith.constant 0 : i32
    %103 = tpu.memref_slice %arg1[%c7_i32, %c0_i32_116, %c0_i32_117] : memref<8x128x128xf32, #tpu.memory_space<any>> -> memref<1x128x128xf32, #tpu.memory_space<any>>
    %104 = tpu.memref_squeeze %103 : memref<1x128x128xf32, #tpu.memory_space<any>> -> memref<128x128xf32, #tpu.memory_space<any>>
    %c0_i32_118 = arith.constant 0 : i32
    %c0_i32_119 = arith.constant 0 : i32
    %105 = tpu.memref_slice %arg3[%c1_i32_114, %c0_i32_118, %c0_i32_119] : memref<2x128x128xf32, #tpu.memory_space<vmem>> -> memref<1x128x128xf32, #tpu.memory_space<vmem>>
    %106 = tpu.memref_squeeze %105 : memref<1x128x128xf32, #tpu.memory_space<vmem>> -> memref<128x128xf32, #tpu.memory_space<vmem>>
    %107 = tpu.memref_slice %arg4[%c1_i32_115] : memref<2x!tpu.dma_semaphore, #tpu.memory_space<semaphore_mem>> -> memref<1x!tpu.dma_semaphore, #tpu.memory_space<semaphore_mem>>
    %108 = tpu.memref_squeeze %107 : memref<1x!tpu.dma_semaphore, #tpu.memory_space<semaphore_mem>> -> memref<!tpu.dma_semaphore, #tpu.memory_space<semaphore_mem>>
    tpu.enqueue_dma source(%104 : memref<128x128xf32, #tpu.memory_space<any>>) target(%106 : memref<128x128xf32, #tpu.memory_space<vmem>>) target_semaphore(%108 : memref<!tpu.dma_semaphore, #tpu.memory_space<semaphore_mem>>)
    %c0_120 = arith.constant 0 : index
    %c0_121 = arith.constant 0 : index
    %c0_122 = arith.constant 0 : index
    %109 = vector.load %arg3[%c0_120, %c0_121, %c0_122] : memref<2x128x128xf32, #tpu.memory_space<vmem>>, vector<1x128x128xf32>
    %110 = vector.shape_cast %109 : vector<1x128x128xf32> to vector<128x128xf32>
    %cst_123 = arith.constant dense<0.000000e+00> : vector<1x128xf32>
    %111 = tpu.matmul %96, %110, %cst_123 {dimension_numbers = #tpu.dot_dimension_numbers<[1], [0], [0], [1], [0, 0, 1, 1], [], []>} : vector<1x128xf32>, vector<128x128xf32>, vector<1x128xf32> -> vector<1x128xf32>
    %c7_i32_124 = arith.constant 7 : i32
    %c1_i32_125 = arith.constant 1 : i32
    %c1_i32_126 = arith.constant 1 : i32
    %c0_i32_127 = arith.constant 0 : i32
    %c0_i32_128 = arith.constant 0 : i32
    %112 = tpu.memref_slice %arg1[%c7_i32_124, %c0_i32_127, %c0_i32_128] : memref<8x128x128xf32, #tpu.memory_space<any>> -> memref<1x128x128xf32, #tpu.memory_space<any>>
    %113 = tpu.memref_squeeze %112 : memref<1x128x128xf32, #tpu.memory_space<any>> -> memref<128x128xf32, #tpu.memory_space<any>>
    %c0_i32_129 = arith.constant 0 : i32
    %c0_i32_130 = arith.constant 0 : i32
    %114 = tpu.memref_slice %arg3[%c1_i32_125, %c0_i32_129, %c0_i32_130] : memref<2x128x128xf32, #tpu.memory_space<vmem>> -> memref<1x128x128xf32, #tpu.memory_space<vmem>>
    %115 = tpu.memref_squeeze %114 : memref<1x128x128xf32, #tpu.memory_space<vmem>> -> memref<128x128xf32, #tpu.memory_space<vmem>>
    %116 = tpu.memref_slice %arg4[%c1_i32_126] : memref<2x!tpu.dma_semaphore, #tpu.memory_space<semaphore_mem>> -> memref<1x!tpu.dma_semaphore, #tpu.memory_space<semaphore_mem>>
    %117 = tpu.memref_squeeze %116 : memref<1x!tpu.dma_semaphore, #tpu.memory_space<semaphore_mem>> -> memref<!tpu.dma_semaphore, #tpu.memory_space<semaphore_mem>>
    tpu.wait_dma2 semaphore(%117 : memref<!tpu.dma_semaphore, #tpu.memory_space<semaphore_mem>>) src(%113 : memref<128x128xf32, #tpu.memory_space<any>>) dst(%115 : memref<128x128xf32, #tpu.memory_space<vmem>>)
    %c1_131 = arith.constant 1 : index
    %c0_132 = arith.constant 0 : index
    %c0_133 = arith.constant 0 : index
    %118 = vector.load %arg3[%c1_131, %c0_132, %c0_133] : memref<2x128x128xf32, #tpu.memory_space<vmem>>, vector<1x128x128xf32>
    %119 = vector.shape_cast %118 : vector<1x128x128xf32> to vector<128x128xf32>
    %cst_134 = arith.constant dense<0.000000e+00> : vector<1x128xf32>
    %120 = tpu.matmul %111, %119, %cst_134 {dimension_numbers = #tpu.dot_dimension_numbers<[1], [0], [0], [1], [0, 0, 1, 1], [], []>} : vector<1x128xf32>, vector<128x128xf32>, vector<1x128xf32> -> vector<1x128xf32>
    %121 = tpu.concatenate %21, %36, %51, %66, %81, %96, %111, %120 in 0 : vector<1x128xf32>, vector<1x128xf32>, vector<1x128xf32>, vector<1x128xf32>, vector<1x128xf32>, vector<1x128xf32>, vector<1x128xf32>, vector<1x128xf32> -> vector<8x128xf32>
    %c0_135 = arith.constant 0 : index
    %c0_136 = arith.constant 0 : index
    %122 = vector.load %arg2[%c0_135, %c0_136] : memref<8x128xf32, #tpu.memory_space<vmem>>, vector<8x128xf32>
    tpu.vector_store %arg2[%c0_135, %c0_136], %121 {strides = array<i32>} : memref<8x128xf32, #tpu.memory_space<vmem>>, vector<8x128xf32>,
    return
  }
}

</mosaic_0001>

<bundles_post_ra>
// kernel: linear_network_forward.1
= control target key start
LH: loop header
LB: loop body
LE: loop exit
PB: predicated region body
PF: predicated region fallthrough
CT: control target
= control target key end

     0   :  { %s1693_s9 = smov [#allocation2]   ;;  %s2015_s0 = inlined_call_operand.vmem [shape: f32[1,128], index: 0, kind: input, shape index: {}]   ;;  %s2016_s1 = inlined_call_operand.hbm [shape: f32[8,128,128], index: 1, kind: input, shape index: {}]   ;;  %s2017_s2 = inlined_call_operand.vmem [shape: f32[8,128], index: 2, kind: output, shape index: {}]  }
   0x1   :  { %s16_s10 = sshll.u32 %s1693_s9, 4  ;;  %v1716_v0 = vld [vmem:[%s2015_s0] sm:$0x1]  ;;  %s1723_s15 = scalar_lea.hbm %s2016_s1, 2048  ;;  %s1718_s10 = int_to_ptr.vmem [resolvable:$true] %s16_s10 }
   0x2   :  { %p1481_p0 = scmp.ne.s32.totalorder %s2016_s1, %s1723_s15  ;;  %s1732_s0 = scalar_lea.hbm %s2016_s1, 16384 }
   0x3   :  { %p1483_p1 = scmp.lt.u32.totalorder %s1732_s0, %s1723_s15  ;;  %p1484_p2 = scmp.lt.u32.totalorder %s1723_s15, %s2016_s1 }
   0x5   :  { %p1485_p3 = por %p1484_p2, %p1483_p1 }
   0x7   :  { %p1486_p4 = pnand %p1485_p3, %p1481_p0 }
   0x9   :  { %1489 = shalt.err (!%p1486_p4)  }
   0xa   :  { %s1490_s24 = scalar_lea.vmem %s1718_s10, 2048  ;;  %s1494_s25 = scalar_lea.vmem %s1718_s10, 4096 }
   0xb   :  { %p1491_p5 = scmp.ne.s32.totalorder %s1718_s10, %s1490_s24  ;;  %p1495_p6 = scmp.lt.s32.totalorder %s1718_s10, %s1718_s10 }
   0xc   :  { %p1496_p7 = scmp.lt.s32.totalorder %s1494_s25, %s1490_s24 }
   0xe   :  { %p1497_p8 = por %p1496_p7, %p1495_p6 }
  0x10   :  { %p1750_p9 = pnand %p1497_p8, %p1491_p5 }
  0x12   :  { %1501 = shalt.err (!%p1750_p9)  }
  0x13   :  { %19 = dma.hbm_to_vmem [thread:$0]  %s2016_s1, 2048, %s1718_s10, [#allocation3] }
  0x14   :  { %1677 = dma.done.wait [#allocation3], 2048 }
  0x15   :  { %1678 = vsyncadd [#allocation3], 4294965248  ;;  %s1694_s29 = smov [#allocation2 + $0x80]   ;;  %v1695_v1 = vmov 0.0|0.0   ;;  %vm1696_vm0 = vmmov 0   ;;  %v1697_v2 = vmov 0.0  }
  0x16   :  { %s34_s30 = sshll.u32 %s1694_s29, 4  ;;  %1283 = vmatprep.subr.bf16.mxu0 %v1695_v1  ;;  %1035 = vmatprep.mubr.msk.f32.mxu0 %vm1696_vm0, %v1697_v2  ;;  %s1768_s5 = scalar_lea.hbm %s2016_s1, 4096  ;;  %s1761_s30 = int_to_ptr.vmem [resolvable:$true] %s34_s30 }
  0x17   :  { %p1503_p10 = scmp.ne.s32.totalorder %s1723_s15, %s1768_s5  ;;  %p1506_p11 = scmp.lt.u32.totalorder %s1732_s0, %s1768_s5 }
  0x18   :  { %p1508_p13 = scmp.lt.u32.totalorder %s1768_s5, %s1723_s15 }
  0x19   :  { %p1507_p12 = por %p1506_p11, %p1484_p2 }
  0x1b   :  { %p1509_p0 = por %p1508_p13, %p1507_p12 }
  0x1d   :  { %p1510_p1 = pnand %p1509_p0, %p1503_p10 }
  0x1f   :  { %1513 = shalt.err (!%p1510_p1)  }
  0x20   :  { %s1514_s8 = scalar_lea.vmem %s1761_s30, 2048  ;;  %p1519_p4 = scmp.lt.s32.totalorder %s1761_s30, %s1718_s10 }
  0x21   :  { %p1515_p3 = scmp.ne.s32.totalorder %s1761_s30, %s1514_s8  ;;  %p1520_p5 = scmp.lt.s32.totalorder %s1494_s25, %s1514_s8 }
  0x23   :  { %p1521_p6 = por %p1520_p5, %p1519_p4 }
  0x25   :  { %p1785_p7 = pnand %p1521_p6, %p1515_p3 }
  0x27   :  { %1525 = shalt.err (!%p1785_p7)  }
  0x28   :  { %37 = dma.hbm_to_vmem [thread:$0]  %s1723_s15, 2048, %s1761_s30, [#allocation3 + $0x1] }
  0x29   :  { %v38_v3 = vld [vmem:[#allocation2] sm:$0xff]  ;;  %v39_v4 = vld [vmem:[#allocation2 + $0x8] sm:$0xff]  ;;  %v40_v5 = vld [vmem:[#allocation2 + $0x10] sm:$0xff] }
  0x2a   :  { %v1284_v6 = vpack.c.bf16 %v39_v4, %v38_v3  ;;  %v41_v7 = vld [vmem:[#allocation2 + $0x18] sm:$0xff]  ;;  %v42_v9 = vld [vmem:[#allocation2 + $0x20] sm:$0xff]  ;;  %v43_v10 = vld [vmem:[#allocation2 + $0x28] sm:$0xff] }
  0x2b   :  { %v1287_v8 = vpack.c.bf16 %v41_v7, %v40_v5  ;;  %v1290_v11 = vpack.c.bf16 %v43_v10, %v42_v9  ;;  %v44_v12 = vld [vmem:[#allocation2 + $0x30] sm:$0xff]  ;;  %v45_v13 = vld [vmem:[#allocation2 + $0x38] sm:$0xff]  ;;  %v46_v15 = vld [vmem:[#allocation2 + $0x40] sm:$0xff] }
  0x2c   :  { %1285 = vmatpush3.bf16.msra.mxu0 %v1284_v6  ;;  %v1293_v14 = vpack.c.bf16 %v45_v13, %v44_v12  ;;  %v47_v16 = vld [vmem:[#allocation2 + $0x48] sm:$0xff]  ;;  %v48_v18 = vld [vmem:[#allocation2 + $0x50] sm:$0xff]  ;;  %v49_v19 = vld [vmem:[#allocation2 + $0x58] sm:$0xff] }
  0x2d   :  { %1286 = vmatprep.subr.bf16.mxu0 %v1695_v1  ;;  %v1296_v17 = vpack.c.bf16 %v47_v16, %v46_v15  ;;  %v1299_v20 = vpack.c.bf16 %v49_v19, %v48_v18  ;;  %v50_v21 = vld [vmem:[#allocation2 + $0x60] sm:$0xff]  ;;  %v51_v22 = vld [vmem:[#allocation2 + $0x68] sm:$0xff]  ;;  %v52_v24 = vld [vmem:[#allocation2 + $0x70] sm:$0xff] }
  0x2e   :  { %v1302_v23 = vpack.c.bf16 %v51_v22, %v50_v21  ;;  %v53_v25 = vld [vmem:[#allocation2 + $0x78] sm:$0xff] }
  0x2f   :  { %v1305_v26 = vpack.c.bf16 %v53_v25, %v52_v24 }
  0x30   :  { %1288 = vmatpush3.bf16.msra.mxu0 %v1287_v8 }
  0x31   :  { %1289 = vmatprep.subr.bf16.mxu0 %v1695_v1 }
  0x34   :  { %1291 = vmatpush3.bf16.msra.mxu0 %v1290_v11 }
  0x35   :  { %1292 = vmatprep.subr.bf16.mxu0 %v1695_v1 }
  0x38   :  { %1294 = vmatpush3.bf16.msra.mxu0 %v1293_v14 }
  0x39   :  { %1295 = vmatprep.subr.bf16.mxu0 %v1695_v1 }
  0x3c   :  { %1297 = vmatpush3.bf16.msra.mxu0 %v1296_v17 }
  0x3d   :  { %1298 = vmatprep.subr.bf16.mxu0 %v1695_v1 }
  0x40   :  { %1300 = vmatpush3.bf16.msra.mxu0 %v1299_v20 }
  0x41   :  { %1301 = vmatprep.subr.bf16.mxu0 %v1695_v1 }
  0x44   :  { %1303 = vmatpush3.bf16.msra.mxu0 %v1302_v23 }
  0x45   :  { %1304 = vmatprep.subr.bf16.mxu0 %v1695_v1 }
  0x48   :  { %1306 = vmatpush3.bf16.msra.mxu0 %v1305_v26 }
  0x4b   :  { %1036 = vmatmul.mubr.f32.vlgmr.msra.gmra.mrb[0].mxu0 %v1716_v0 }
 0x11e   :  { %v1801_v27 = vpop.f32.mrb[0].mxu0 }
 0x11f   :  { %v1037_v28 = vpop.f32.mrb[1].mxu0 }
 0x120   :  { %1679 = dma.done.wait [#allocation3 + $0x1], 2048 }
 0x121   :  { %1680 = vsyncadd [#allocation3 + $0x1], 4294965248  ;;  %1307 = vmatprep.subr.bf16.mxu1 %v1695_v1  ;;  %1070 = vmatprep.mubr.msk.f32.mxu1 %vm1696_vm0, %v1697_v2  ;;  %s1809_s13 = scalar_lea.hbm %s2016_s1, 6144  ;;  %p1530_p8 = scmp.lt.u32.totalorder %s1768_s5, %s2016_s1 }
 0x122   :  { %p1528_p2 = scmp.ne.s32.totalorder %s1768_s5, %s1809_s13  ;;  %p1531_p10 = scmp.lt.u32.totalorder %s1732_s0, %s1809_s13 }
 0x123   :  { %p1533_p12 = scmp.lt.u32.totalorder %s1809_s13, %s1768_s5 }
 0x124   :  { %p1532_p11 = por %p1531_p10, %p1530_p8 }
 0x126   :  { %p1534_p13 = por %p1533_p12, %p1532_p11 }
 0x128   :  { %p1535_p0 = pnand %p1534_p13, %p1528_p2 }
 0x12a   :  { %1538 = shalt.err (!%p1535_p0)  }
 0x12b   :  { %1550 = shalt.err (!%p1750_p9)  }
 0x12c   :  { %137 = dma.hbm_to_vmem [thread:$0]  %s1768_s5, 2048, %s1718_s10, [#allocation3] }
 0x12d   :  { %v138_v29 = vld [vmem:[#allocation2 + $0x80] sm:$0xff]  ;;  %v139_v30 = vld [vmem:[#allocation2 + $0x88] sm:$0xff]  ;;  %v140_v31 = vld [vmem:[#allocation2 + $0x90] sm:$0xff] }
 0x12e   :  { %v1308_v32 = vpack.c.bf16 %v139_v30, %v138_v29  ;;  %v141_v33 = vld [vmem:[#allocation2 + $0x98] sm:$0xff]  ;;  %v142_v35 = vld [vmem:[#allocation2 + $0xa0] sm:$0xff]  ;;  %v143_v36 = vld [vmem:[#allocation2 + $0xa8] sm:$0xff] }
 0x12f   :  { %v1311_v34 = vpack.c.bf16 %v141_v33, %v140_v31  ;;  %v1314_v37 = vpack.c.bf16 %v143_v36, %v142_v35  ;;  %v144_v38 = vld [vmem:[#allocation2 + $0xb0] sm:$0xff]  ;;  %v145_v39 = vld [vmem:[#allocation2 + $0xb8] sm:$0xff]  ;;  %v146_v41 = vld [vmem:[#allocation2 + $0xc0] sm:$0xff] }
 0x130   :  { %1309 = vmatpush3.bf16.msra.mxu1 %v1308_v32  ;;  %v1317_v40 = vpack.c.bf16 %v145_v39, %v144_v38  ;;  %v147_v42 = vld [vmem:[#allocation2 + $0xc8] sm:$0xff]  ;;  %v148_v44 = vld [vmem:[#allocation2 + $0xd0] sm:$0xff]  ;;  %v149_v45 = vld [vmem:[#allocation2 + $0xd8] sm:$0xff] }
 0x131   :  { %1310 = vmatprep.subr.bf16.mxu1 %v1695_v1  ;;  %v1320_v43 = vpack.c.bf16 %v147_v42, %v146_v41  ;;  %v1323_v46 = vpack.c.bf16 %v149_v45, %v148_v44  ;;  %v150_v47 = vld [vmem:[#allocation2 + $0xe0] sm:$0xff]  ;;  %v151_v48 = vld [vmem:[#allocation2 + $0xe8] sm:$0xff]  ;;  %v152_v50 = vld [vmem:[#allocation2 + $0xf0] sm:$0xff] }
 0x132   :  { %v1326_v49 = vpack.c.bf16 %v151_v48, %v150_v47  ;;  %v153_v51 = vld [vmem:[#allocation2 + $0xf8] sm:$0xff] }
 0x133   :  { %v1329_v52 = vpack.c.bf16 %v153_v51, %v152_v50 }
 0x134   :  { %1312 = vmatpush3.bf16.msra.mxu1 %v1311_v34 }
 0x135   :  { %1313 = vmatprep.subr.bf16.mxu1 %v1695_v1 }
 0x138   :  { %1315 = vmatpush3.bf16.msra.mxu1 %v1314_v37 }
 0x139   :  { %1316 = vmatprep.subr.bf16.mxu1 %v1695_v1 }
 0x13c   :  { %1318 = vmatpush3.bf16.msra.mxu1 %v1317_v40 }
 0x13d   :  { %1319 = vmatprep.subr.bf16.mxu1 %v1695_v1 }
 0x140   :  { %1321 = vmatpush3.bf16.msra.mxu1 %v1320_v43 }
 0x141   :  { %1322 = vmatprep.subr.bf16.mxu1 %v1695_v1 }
 0x144   :  { %1324 = vmatpush3.bf16.msra.mxu1 %v1323_v46 }
 0x145   :  { %1325 = vmatprep.subr.bf16.mxu1 %v1695_v1 }
 0x148   :  { %1327 = vmatpush3.bf16.msra.mxu1 %v1326_v49 }
 0x149   :  { %1328 = vmatprep.subr.bf16.mxu1 %v1695_v1 }
 0x14c   :  { %1330 = vmatpush3.bf16.msra.mxu1 %v1329_v52 }
 0x14f   :  { %1071 = vmatmul.mubr.f32.vlgmr.msra.gmra.mrb[0].mxu1 %v1801_v27 }
 0x222   :  { %v1833_v53 = vpop.f32.mrb[0].mxu1 }
 0x223   :  { %v1072_v54 = vpop.f32.mrb[1].mxu1 }
 0x224   :  { %1681 = dma.done.wait [#allocation3], 2048 }
 0x225   :  { %1682 = vsyncadd [#allocation3], 4294965248  ;;  %1331 = vmatprep.subr.bf16.mxu0 %v1695_v1  ;;  %1105 = vmatprep.mubr.msk.f32.mxu0 %vm1696_vm0, %v1697_v2  ;;  %s1841_s18 = scalar_lea.hbm %s2016_s1, 8192  ;;  %p1555_p3 = scmp.lt.u32.totalorder %s1809_s13, %s2016_s1 }
 0x226   :  { %p1553_p1 = scmp.ne.s32.totalorder %s1809_s13, %s1841_s18  ;;  %p1556_p4 = scmp.lt.u32.totalorder %s1732_s0, %s1841_s18 }
 0x227   :  { %p1558_p6 = scmp.lt.u32.totalorder %s1841_s18, %s1809_s13 }
 0x228   :  { %p1557_p5 = por %p1556_p4, %p1555_p3 }
 0x22a   :  { %p1559_p2 = por %p1558_p6, %p1557_p5 }
 0x22c   :  { %p1560_p8 = pnand %p1559_p2, %p1553_p1 }
 0x22e   :  { %1563 = shalt.err (!%p1560_p8)  }
 0x22f   :  { %1575 = shalt.err (!%p1785_p7)  }
 0x230   :  { %237 = dma.hbm_to_vmem [thread:$0]  %s1809_s13, 2048, %s1761_s30, [#allocation3 + $0x1] }
 0x231   :  { %v238_v55 = vld [vmem:[#allocation2] sm:$0xff]  ;;  %v239_v56 = vld [vmem:[#allocation2 + $0x8] sm:$0xff]  ;;  %v240_v57 = vld [vmem:[#allocation2 + $0x10] sm:$0xff] }
 0x232   :  { %v1332_v58 = vpack.c.bf16 %v239_v56, %v238_v55  ;;  %v241_v59 = vld [vmem:[#allocation2 + $0x18] sm:$0xff]  ;;  %v242_v61 = vld [vmem:[#allocation2 + $0x20] sm:$0xff]  ;;  %v243_v62 = vld [vmem:[#allocation2 + $0x28] sm:$0xff] }
 0x233   :  { %v1335_v60 = vpack.c.bf16 %v241_v59, %v240_v57  ;;  %v1338_v63 = vpack.c.bf16 %v243_v62, %v242_v61  ;;  %v244_v0 = vld [vmem:[#allocation2 + $0x30] sm:$0xff]  ;;  %v245_v3 = vld [vmem:[#allocation2 + $0x38] sm:$0xff]  ;;  %v246_v5 = vld [vmem:[#allocation2 + $0x40] sm:$0xff] }
 0x234   :  { %1333 = vmatpush3.bf16.msra.mxu0 %v1332_v58  ;;  %v1341_v4 = vpack.c.bf16 %v245_v3, %v244_v0  ;;  %v247_v6 = vld [vmem:[#allocation2 + $0x48] sm:$0xff]  ;;  %v248_v8 = vld [vmem:[#allocation2 + $0x50] sm:$0xff]  ;;  %v249_v9 = vld [vmem:[#allocation2 + $0x58] sm:$0xff] }
 0x235   :  { %1334 = vmatprep.subr.bf16.mxu0 %v1695_v1  ;;  %v1344_v7 = vpack.c.bf16 %v247_v6, %v246_v5  ;;  %v1347_v10 = vpack.c.bf16 %v249_v9, %v248_v8  ;;  %v250_v11 = vld [vmem:[#allocation2 + $0x60] sm:$0xff]  ;;  %v251_v12 = vld [vmem:[#allocation2 + $0x68] sm:$0xff]  ;;  %v252_v14 = vld [vmem:[#allocation2 + $0x70] sm:$0xff] }
 0x236   :  { %v1350_v13 = vpack.c.bf16 %v251_v12, %v250_v11  ;;  %v253_v15 = vld [vmem:[#allocation2 + $0x78] sm:$0xff] }
 0x237   :  { %v1353_v16 = vpack.c.bf16 %v253_v15, %v252_v14 }
 0x238   :  { %1336 = vmatpush3.bf16.msra.mxu0 %v1335_v60 }
 0x239   :  { %1337 = vmatprep.subr.bf16.mxu0 %v1695_v1 }
 0x23c   :  { %1339 = vmatpush3.bf16.msra.mxu0 %v1338_v63 }
 0x23d   :  { %1340 = vmatprep.subr.bf16.mxu0 %v1695_v1 }
 0x240   :  { %1342 = vmatpush3.bf16.msra.mxu0 %v1341_v4 }
 0x241   :  { %1343 = vmatprep.subr.bf16.mxu0 %v1695_v1 }
 0x244   :  { %1345 = vmatpush3.bf16.msra.mxu0 %v1344_v7 }
 0x245   :  { %1346 = vmatprep.subr.bf16.mxu0 %v1695_v1 }
 0x248   :  { %1348 = vmatpush3.bf16.msra.mxu0 %v1347_v10 }
 0x249   :  { %1349 = vmatprep.subr.bf16.mxu0 %v1695_v1 }
 0x24c   :  { %1351 = vmatpush3.bf16.msra.mxu0 %v1350_v13 }
 0x24d   :  { %1352 = vmatprep.subr.bf16.mxu0 %v1695_v1 }
 0x250   :  { %1354 = vmatpush3.bf16.msra.mxu0 %v1353_v16 }
 0x253   :  { %1106 = vmatmul.mubr.f32.vlgmr.msra.gmra.mrb[2].mxu0 %v1833_v53 }
 0x326   :  { %v1865_v17 = vpop.f32.mrb[2].mxu0 }
 0x327   :  { %v1107_v18 = vpop.f32.mrb[3].mxu0 }
 0x328   :  { %1683 = dma.done.wait [#allocation3 + $0x1], 2048 }
 0x329   :  { %1684 = vsyncadd [#allocation3 + $0x1], 4294965248  ;;  %1355 = vmatprep.subr.bf16.mxu1 %v1695_v1  ;;  %1140 = vmatprep.mubr.msk.f32.mxu1 %vm1696_vm0, %v1697_v2  ;;  %s1873_s23 = scalar_lea.hbm %s2016_s1, 10240  ;;  %p1580_p11 = scmp.lt.u32.totalorder %s1841_s18, %s2016_s1 }
 0x32a   :  { %p1578_p10 = scmp.ne.s32.totalorder %s1841_s18, %s1873_s23  ;;  %p1581_p12 = scmp.lt.u32.totalorder %s1732_s0, %s1873_s23 }
 0x32b   :  { %p1583_p0 = scmp.lt.u32.totalorder %s1873_s23, %s1841_s18 }
 0x32c   :  { %p1582_p13 = por %p1581_p12, %p1580_p11 }
 0x32e   :  { %p1584_p1 = por %p1583_p0, %p1582_p13 }
 0x330   :  { %p1585_p3 = pnand %p1584_p1, %p1578_p10 }
 0x332   :  { %1588 = shalt.err (!%p1585_p3)  }
 0x333   :  { %1600 = shalt.err (!%p1750_p9)  }
 0x334   :  { %337 = dma.hbm_to_vmem [thread:$0]  %s1841_s18, 2048, %s1718_s10, [#allocation3] }
 0x335   :  { %v338_v19 = vld [vmem:[#allocation2 + $0x80] sm:$0xff]  ;;  %v339_v20 = vld [vmem:[#allocation2 + $0x88] sm:$0xff]  ;;  %v340_v21 = vld [vmem:[#allocation2 + $0x90] sm:$0xff] }
 0x336   :  { %v1356_v22 = vpack.c.bf16 %v339_v20, %v338_v19  ;;  %v341_v23 = vld [vmem:[#allocation2 + $0x98] sm:$0xff]  ;;  %v342_v25 = vld [vmem:[#allocation2 + $0xa0] sm:$0xff]  ;;  %v343_v26 = vld [vmem:[#allocation2 + $0xa8] sm:$0xff] }
 0x337   :  { %v1359_v24 = vpack.c.bf16 %v341_v23, %v340_v21  ;;  %v1362_v28 = vpack.c.bf16 %v343_v26, %v342_v25  ;;  %v344_v29 = vld [vmem:[#allocation2 + $0xb0] sm:$0xff]  ;;  %v345_v30 = vld [vmem:[#allocation2 + $0xb8] sm:$0xff]  ;;  %v346_v32 = vld [vmem:[#allocation2 + $0xc0] sm:$0xff] }
 0x338   :  { %1357 = vmatpush3.bf16.msra.mxu1 %v1356_v22  ;;  %v1365_v31 = vpack.c.bf16 %v345_v30, %v344_v29  ;;  %v347_v33 = vld [vmem:[#allocation2 + $0xc8] sm:$0xff]  ;;  %v348_v35 = vld [vmem:[#allocation2 + $0xd0] sm:$0xff]  ;;  %v349_v36 = vld [vmem:[#allocation2 + $0xd8] sm:$0xff] }
 0x339   :  { %1358 = vmatprep.subr.bf16.mxu1 %v1695_v1  ;;  %v1368_v34 = vpack.c.bf16 %v347_v33, %v346_v32  ;;  %v1371_v37 = vpack.c.bf16 %v349_v36, %v348_v35  ;;  %v350_v38 = vld [vmem:[#allocation2 + $0xe0] sm:$0xff]  ;;  %v351_v39 = vld [vmem:[#allocation2 + $0xe8] sm:$0xff]  ;;  %v352_v41 = vld [vmem:[#allocation2 + $0xf0] sm:$0xff] }
 0x33a   :  { %v1374_v40 = vpack.c.bf16 %v351_v39, %v350_v38  ;;  %v353_v42 = vld [vmem:[#allocation2 + $0xf8] sm:$0xff] }
 0x33b   :  { %v1377_v43 = vpack.c.bf16 %v353_v42, %v352_v41 }
 0x33c   :  { %1360 = vmatpush3.bf16.msra.mxu1 %v1359_v24 }
 0x33d   :  { %1361 = vmatprep.subr.bf16.mxu1 %v1695_v1 }
 0x340   :  { %1363 = vmatpush3.bf16.msra.mxu1 %v1362_v28 }
 0x341   :  { %1364 = vmatprep.subr.bf16.mxu1 %v1695_v1 }
 0x344   :  { %1366 = vmatpush3.bf16.msra.mxu1 %v1365_v31 }
 0x345   :  { %1367 = vmatprep.subr.bf16.mxu1 %v1695_v1 }
 0x348   :  { %1369 = vmatpush3.bf16.msra.mxu1 %v1368_v34 }
 0x349   :  { %1370 = vmatprep.subr.bf16.mxu1 %v1695_v1 }
 0x34c   :  { %1372 = vmatpush3.bf16.msra.mxu1 %v1371_v37 }
 0x34d   :  { %1373 = vmatprep.subr.bf16.mxu1 %v1695_v1 }
 0x350   :  { %1375 = vmatpush3.bf16.msra.mxu1 %v1374_v40 }
 0x351   :  { %1376 = vmatprep.subr.bf16.mxu1 %v1695_v1 }
 0x354   :  { %1378 = vmatpush3.bf16.msra.mxu1 %v1377_v43 }
 0x357   :  { %1141 = vmatmul.mubr.f32.vlgmr.msra.gmra.mrb[2].mxu1 %v1865_v17 }
 0x42a   :  { %v1897_v44 = vpop.f32.mrb[2].mxu1 }
 0x42b   :  { %v1142_v45 = vpop.f32.mrb[3].mxu1 }
 0x42c   :  { %1685 = dma.done.wait [#allocation3], 2048 }
 0x42d   :  { %1686 = vsyncadd [#allocation3], 4294965248  ;;  %1379 = vmatprep.subr.bf16.mxu0 %v1695_v1  ;;  %1175 = vmatprep.mubr.msk.f32.mxu0 %vm1696_vm0, %v1697_v2  ;;  %s1905_s29 = scalar_lea.hbm %s2016_s1, 12288  ;;  %p1605_p5 = scmp.lt.u32.totalorder %s1873_s23, %s2016_s1 }
 0x42e   :  { %p1603_p4 = scmp.ne.s32.totalorder %s1873_s23, %s1905_s29  ;;  %p1606_p6 = scmp.lt.u32.totalorder %s1732_s0, %s1905_s29 }
 0x42f   :  { %p1608_p8 = scmp.lt.u32.totalorder %s1905_s29, %s1873_s23 }
 0x430   :  { %p1607_p2 = por %p1606_p6, %p1605_p5 }
 0x432   :  { %p1609_p10 = por %p1608_p8, %p1607_p2 }
 0x434   :  { %p1610_p11 = pnand %p1609_p10, %p1603_p4 }
 0x436   :  { %1613 = shalt.err (!%p1610_p11)  }
 0x437   :  { %1625 = shalt.err (!%p1785_p7)  }
 0x438   :  { %437 = dma.hbm_to_vmem [thread:$0]  %s1873_s23, 2048, %s1761_s30, [#allocation3 + $0x1] }
 0x439   :  { %v438_v46 = vld [vmem:[#allocation2] sm:$0xff]  ;;  %v439_v47 = vld [vmem:[#allocation2 + $0x8] sm:$0xff]  ;;  %v440_v48 = vld [vmem:[#allocation2 + $0x10] sm:$0xff] }
 0x43a   :  { %v1380_v49 = vpack.c.bf16 %v439_v47, %v438_v46  ;;  %v441_v50 = vld [vmem:[#allocation2 + $0x18] sm:$0xff]  ;;  %v442_v52 = vld [vmem:[#allocation2 + $0x20] sm:$0xff]  ;;  %v443_v54 = vld [vmem:[#allocation2 + $0x28] sm:$0xff] }
 0x43b   :  { %v1383_v51 = vpack.c.bf16 %v441_v50, %v440_v48  ;;  %v1386_v55 = vpack.c.bf16 %v443_v54, %v442_v52  ;;  %v444_v56 = vld [vmem:[#allocation2 + $0x30] sm:$0xff]  ;;  %v445_v57 = vld [vmem:[#allocation2 + $0x38] sm:$0xff]  ;;  %v446_v59 = vld [vmem:[#allocation2 + $0x40] sm:$0xff] }
 0x43c   :  { %1381 = vmatpush3.bf16.msra.mxu0 %v1380_v49  ;;  %v1389_v58 = vpack.c.bf16 %v445_v57, %v444_v56  ;;  %v447_v60 = vld [vmem:[#allocation2 + $0x48] sm:$0xff]  ;;  %v448_v62 = vld [vmem:[#allocation2 + $0x50] sm:$0xff]  ;;  %v449_v63 = vld [vmem:[#allocation2 + $0x58] sm:$0xff] }
 0x43d   :  { %1382 = vmatprep.subr.bf16.mxu0 %v1695_v1  ;;  %v1392_v61 = vpack.c.bf16 %v447_v60, %v446_v59  ;;  %v1395_v0 = vpack.c.bf16 %v449_v63, %v448_v62  ;;  %v450_v3 = vld [vmem:[#allocation2 + $0x60] sm:$0xff]  ;;  %v451_v4 = vld [vmem:[#allocation2 + $0x68] sm:$0xff]  ;;  %v452_v6 = vld [vmem:[#allocation2 + $0x70] sm:$0xff] }
 0x43e   :  { %v1398_v5 = vpack.c.bf16 %v451_v4, %v450_v3  ;;  %v453_v7 = vld [vmem:[#allocation2 + $0x78] sm:$0xff] }
 0x43f   :  { %v1401_v8 = vpack.c.bf16 %v453_v7, %v452_v6 }
 0x440   :  { %1384 = vmatpush3.bf16.msra.mxu0 %v1383_v51 }
 0x441   :  { %1385 = vmatprep.subr.bf16.mxu0 %v1695_v1 }
 0x444   :  { %1387 = vmatpush3.bf16.msra.mxu0 %v1386_v55 }
 0x445   :  { %1388 = vmatprep.subr.bf16.mxu0 %v1695_v1 }
 0x448   :  { %1390 = vmatpush3.bf16.msra.mxu0 %v1389_v58 }
 0x449   :  { %1391 = vmatprep.subr.bf16.mxu0 %v1695_v1 }
 0x44c   :  { %1393 = vmatpush3.bf16.msra.mxu0 %v1392_v61 }
 0x44d   :  { %1394 = vmatprep.subr.bf16.mxu0 %v1695_v1 }
 0x450   :  { %1396 = vmatpush3.bf16.msra.mxu0 %v1395_v0 }
 0x451   :  { %1397 = vmatprep.subr.bf16.mxu0 %v1695_v1 }
 0x454   :  { %1399 = vmatpush3.bf16.msra.mxu0 %v1398_v5 }
 0x455   :  { %1400 = vmatprep.subr.bf16.mxu0 %v1695_v1 }
 0x458   :  { %1402 = vmatpush3.bf16.msra.mxu0 %v1401_v8 }
 0x45b   :  { %1176 = vmatmul.mubr.f32.vlgmr.msra.gmra.mrb[4].mxu0 %v1897_v44 }
 0x52e   :  { %v1929_v9 = vpop.f32.mrb[4].mxu0 }
 0x52f   :  { %v1177_v10 = vpop.f32.mrb[5].mxu0 }
 0x530   :  { %1687 = dma.done.wait [#allocation3 + $0x1], 2048 }
 0x531   :  { %1688 = vsyncadd [#allocation3 + $0x1], 4294965248  ;;  %1403 = vmatprep.subr.bf16.mxu1 %v1695_v1  ;;  %1210 = vmatprep.mubr.msk.f32.mxu1 %vm1696_vm0, %v1697_v2  ;;  %s1937_s7 = scalar_lea.hbm %s2016_s1, 14336  ;;  %p1630_p13 = scmp.lt.u32.totalorder %s1905_s29, %s2016_s1 }
 0x532   :  { %p1628_p12 = scmp.ne.s32.totalorder %s1905_s29, %s1937_s7  ;;  %p1631_p0 = scmp.lt.u32.totalorder %s1732_s0, %s1937_s7 }
 0x533   :  { %p1633_p3 = scmp.lt.u32.totalorder %s1937_s7, %s1905_s29 }
 0x534   :  { %p1632_p1 = por %p1631_p0, %p1630_p13 }
 0x536   :  { %p1634_p4 = por %p1633_p3, %p1632_p1 }
 0x538   :  { %p1635_p5 = pnand %p1634_p4, %p1628_p12 }
 0x53a   :  { %1638 = shalt.err (!%p1635_p5)  }
 0x53b   :  { %1650 = shalt.err (!%p1750_p9)  }
 0x53c   :  { %537 = dma.hbm_to_vmem [thread:$0]  %s1905_s29, 2048, %s1718_s10, [#allocation3] }
 0x53d   :  { %v538_v11 = vld [vmem:[#allocation2 + $0x80] sm:$0xff]  ;;  %v539_v12 = vld [vmem:[#allocation2 + $0x88] sm:$0xff]  ;;  %v540_v13 = vld [vmem:[#allocation2 + $0x90] sm:$0xff] }
 0x53e   :  { %v1404_v14 = vpack.c.bf16 %v539_v12, %v538_v11  ;;  %v541_v15 = vld [vmem:[#allocation2 + $0x98] sm:$0xff]  ;;  %v542_v18 = vld [vmem:[#allocation2 + $0xa0] sm:$0xff]  ;;  %v543_v19 = vld [vmem:[#allocation2 + $0xa8] sm:$0xff] }
 0x53f   :  { %v1407_v16 = vpack.c.bf16 %v541_v15, %v540_v13  ;;  %v1410_v20 = vpack.c.bf16 %v543_v19, %v542_v18  ;;  %v544_v21 = vld [vmem:[#allocation2 + $0xb0] sm:$0xff]  ;;  %v545_v22 = vld [vmem:[#allocation2 + $0xb8] sm:$0xff]  ;;  %v546_v24 = vld [vmem:[#allocation2 + $0xc0] sm:$0xff] }
 0x540   :  { %1405 = vmatpush3.bf16.msra.mxu1 %v1404_v14  ;;  %v1413_v23 = vpack.c.bf16 %v545_v22, %v544_v21  ;;  %v547_v25 = vld [vmem:[#allocation2 + $0xc8] sm:$0xff]  ;;  %v548_v28 = vld [vmem:[#allocation2 + $0xd0] sm:$0xff]  ;;  %v549_v29 = vld [vmem:[#allocation2 + $0xd8] sm:$0xff] }
 0x541   :  { %1406 = vmatprep.subr.bf16.mxu1 %v1695_v1  ;;  %v1416_v26 = vpack.c.bf16 %v547_v25, %v546_v24  ;;  %v1419_v30 = vpack.c.bf16 %v549_v29, %v548_v28  ;;  %v550_v31 = vld [vmem:[#allocation2 + $0xe0] sm:$0xff]  ;;  %v551_v32 = vld [vmem:[#allocation2 + $0xe8] sm:$0xff]  ;;  %v552_v34 = vld [vmem:[#allocation2 + $0xf0] sm:$0xff] }
 0x542   :  { %v1422_v33 = vpack.c.bf16 %v551_v32, %v550_v31  ;;  %v553_v35 = vld [vmem:[#allocation2 + $0xf8] sm:$0xff] }
 0x543   :  { %v1425_v36 = vpack.c.bf16 %v553_v35, %v552_v34 }
 0x544   :  { %1408 = vmatpush3.bf16.msra.mxu1 %v1407_v16 }
 0x545   :  { %1409 = vmatprep.subr.bf16.mxu1 %v1695_v1 }
 0x548   :  { %1411 = vmatpush3.bf16.msra.mxu1 %v1410_v20 }
 0x549   :  { %1412 = vmatprep.subr.bf16.mxu1 %v1695_v1 }
 0x54c   :  { %1414 = vmatpush3.bf16.msra.mxu1 %v1413_v23 }
 0x54d   :  { %1415 = vmatprep.subr.bf16.mxu1 %v1695_v1 }
 0x550   :  { %1417 = vmatpush3.bf16.msra.mxu1 %v1416_v26 }
 0x551   :  { %1418 = vmatprep.subr.bf16.mxu1 %v1695_v1 }
 0x554   :  { %1420 = vmatpush3.bf16.msra.mxu1 %v1419_v30 }
 0x555   :  { %1421 = vmatprep.subr.bf16.mxu1 %v1695_v1 }
 0x558   :  { %1423 = vmatpush3.bf16.msra.mxu1 %v1422_v33 }
 0x559   :  { %1424 = vmatprep.subr.bf16.mxu1 %v1695_v1 }
 0x55c   :  { %1426 = vmatpush3.bf16.msra.mxu1 %v1425_v36 }
 0x55f   :  { %1211 = vmatmul.mubr.f32.vlgmr.msra.gmra.mrb[4].mxu1 %v1929_v9 }
 0x632   :  { %v1964_v37 = vpop.f32.mrb[4].mxu1 }
 0x633   :  { %v1212_v38 = vpop.f32.mrb[5].mxu1 }
 0x634   :  { %1689 = dma.done.wait [#allocation3], 2048 }
 0x635   :  { %1690 = vsyncadd [#allocation3], 4294965248  ;;  %1427 = vmatprep.subr.bf16.mxu0 %v1695_v1  ;;  %1245 = vmatprep.mubr.msk.f32.mxu0 %vm1696_vm0, %v1697_v2  ;;  %p1653_p9 = scmp.ne.s32.totalorder %s1937_s7, %s1732_s0  ;;  %p1655_p6 = scmp.lt.u32.totalorder %s1937_s7, %s2016_s1 }
 0x636   :  { %p1656_p2 = scmp.lt.u32.totalorder %s1732_s0, %s1732_s0 }
 0x638   :  { %p1657_p8 = por %p1656_p2, %p1655_p6 }
 0x63a   :  { %p1659_p10 = por %p1657_p8, %p1631_p0 }
 0x63c   :  { %p1660_p11 = pnand %p1659_p10, %p1653_p9 }
 0x63e   :  { %1663 = shalt.err (!%p1660_p11)  }
 0x63f   :  { %1675 = shalt.err (!%p1785_p7)  }
 0x640   :  { %637 = dma.hbm_to_vmem [thread:$0]  %s1937_s7, 2048, %s1761_s30, [#allocation3 + $0x1] }
 0x641   :  { %v638_v39 = vld [vmem:[#allocation2] sm:$0xff]  ;;  %v639_v40 = vld [vmem:[#allocation2 + $0x8] sm:$0xff]  ;;  %v640_v41 = vld [vmem:[#allocation2 + $0x10] sm:$0xff] }
 0x642   :  { %v1428_v42 = vpack.c.bf16 %v639_v40, %v638_v39  ;;  %v641_v43 = vld [vmem:[#allocation2 + $0x18] sm:$0xff]  ;;  %v642_v46 = vld [vmem:[#allocation2 + $0x20] sm:$0xff]  ;;  %v643_v47 = vld [vmem:[#allocation2 + $0x28] sm:$0xff] }
 0x643   :  { %v1431_v45 = vpack.c.bf16 %v641_v43, %v640_v41  ;;  %v1434_v48 = vpack.c.bf16 %v643_v47, %v642_v46  ;;  %v644_v49 = vld [vmem:[#allocation2 + $0x30] sm:$0xff]  ;;  %v645_v50 = vld [vmem:[#allocation2 + $0x38] sm:$0xff]  ;;  %v646_v52 = vld [vmem:[#allocation2 + $0x40] sm:$0xff] }
 0x644   :  { %1429 = vmatpush3.bf16.msra.mxu0 %v1428_v42  ;;  %v1437_v51 = vpack.c.bf16 %v645_v50, %v644_v49  ;;  %v647_v54 = vld [vmem:[#allocation2 + $0x48] sm:$0xff]  ;;  %v648_v56 = vld [vmem:[#allocation2 + $0x50] sm:$0xff]  ;;  %v649_v57 = vld [vmem:[#allocation2 + $0x58] sm:$0xff] }
 0x645   :  { %1430 = vmatprep.subr.bf16.mxu0 %v1695_v1  ;;  %v1440_v55 = vpack.c.bf16 %v647_v54, %v646_v52  ;;  %v1443_v58 = vpack.c.bf16 %v649_v57, %v648_v56  ;;  %v650_v59 = vld [vmem:[#allocation2 + $0x60] sm:$0xff]  ;;  %v651_v60 = vld [vmem:[#allocation2 + $0x68] sm:$0xff]  ;;  %v652_v62 = vld [vmem:[#allocation2 + $0x70] sm:$0xff] }
 0x646   :  { %v1446_v61 = vpack.c.bf16 %v651_v60, %v650_v59  ;;  %v653_v63 = vld [vmem:[#allocation2 + $0x78] sm:$0xff] }
 0x647   :  { %v1449_v0 = vpack.c.bf16 %v653_v63, %v652_v62 }
 0x648   :  { %1432 = vmatpush3.bf16.msra.mxu0 %v1431_v45 }
 0x649   :  { %1433 = vmatprep.subr.bf16.mxu0 %v1695_v1 }
 0x64c   :  { %1435 = vmatpush3.bf16.msra.mxu0 %v1434_v48 }
 0x64d   :  { %1436 = vmatprep.subr.bf16.mxu0 %v1695_v1 }
 0x650   :  { %1438 = vmatpush3.bf16.msra.mxu0 %v1437_v51 }
 0x651   :  { %1439 = vmatprep.subr.bf16.mxu0 %v1695_v1 }
 0x654   :  { %1441 = vmatpush3.bf16.msra.mxu0 %v1440_v55 }
 0x655   :  { %1442 = vmatprep.subr.bf16.mxu0 %v1695_v1 }
 0x658   :  { %1444 = vmatpush3.bf16.msra.mxu0 %v1443_v58 }
 0x659   :  { %1445 = vmatprep.subr.bf16.mxu0 %v1695_v1 }
 0x65c   :  { %1447 = vmatpush3.bf16.msra.mxu0 %v1446_v61 }
 0x65d   :  { %1448 = vmatprep.subr.bf16.mxu0 %v1695_v1 }
 0x660   :  { %1450 = vmatpush3.bf16.msra.mxu0 %v1449_v0 }
 0x663   :  { %1246 = vmatmul.mubr.f32.vlgmr.msra.gmra.mrb[6].mxu0 %v1964_v37 }
 0x736   :  { %v1992_v3 = vpop.f32.mrb[6].mxu0 }
 0x737   :  { %v1247_v4 = vpop.f32.mrb[7].mxu0 }
 0x738   :  { %1691 = dma.done.wait [#allocation3 + $0x1], 2048 }
 0x739   :  { %1692 = vsyncadd [#allocation3 + $0x1], 4294965248  ;;  %1451 = vmatprep.subr.bf16.mxu1 %v1695_v1  ;;  %1280 = vmatprep.mubr.msk.f32.mxu1 %vm1696_vm0, %v1697_v2  ;;  %v726_v5 = vld [vmem:[#allocation2 + $0x80] sm:$0xff]  ;;  %v727_v6 = vld [vmem:[#allocation2 + $0x88] sm:$0xff]  ;;  %v813_v31 = vrot.slane %v1833_v53, 7  ;;  %vm833_vm1 = vcmask 1040384  }
 0x73a   :  { %v728_v7 = vld [vmem:[#allocation2 + $0x90] sm:$0xff]  ;;  %v1452_v8 = vpack.c.bf16 %v727_v6, %v726_v5  ;;  %v729_v10 = vld [vmem:[#allocation2 + $0x98] sm:$0xff]  ;;  %v730_v12 = vld [vmem:[#allocation2 + $0xa0] sm:$0xff]  ;;  %v816_v32 = vrot.slane %v1865_v17, 6  ;;  %vm835_vm2 = vcmask 1041408   ;;  %v819_v34 = vrot.slane %v1897_v44, 5 }
 0x73b   :  { %v1455_v11 = vpack.c.bf16 %v729_v10, %v728_v7  ;;  %v731_v13 = vld [vmem:[#allocation2 + $0xa8] sm:$0xff]  ;;  %v732_v15 = vld [vmem:[#allocation2 + $0xb0] sm:$0xff]  ;;  %v733_v16 = vld [vmem:[#allocation2 + $0xb8] sm:$0xff]  ;;  %v834_v33 = vsel %vm833_vm1, %v1801_v27, %v813_v31  ;;  %vm837_vm3 = vcmask 1042432   ;;  %v822_v36 = vrot.slane %v1929_v9, 4 }
 0x73c   :  { %1453 = vmatpush3.bf16.msra.mxu1 %v1452_v8  ;;  %v1458_v14 = vpack.c.bf16 %v731_v13, %v730_v12  ;;  %v1461_v18 = vpack.c.bf16 %v733_v16, %v732_v15  ;;  %v734_v2 = vld [vmem:[#allocation2 + $0xc0] sm:$0xff]  ;;  %v735_v19 = vld [vmem:[#allocation2 + $0xc8] sm:$0xff]  ;;  %v736_v21 = vld [vmem:[#allocation2 + $0xd0] sm:$0xff]  ;;  %v836_v35 = vsel %vm835_vm2, %v834_v33, %v816_v32  ;;  %vm839_vm4 = vcmask 1043456  }
 0x73d   :  { %1454 = vmatprep.subr.bf16.mxu1 %v1695_v1  ;;  %v1464_v20 = vpack.c.bf16 %v735_v19, %v734_v2  ;;  %v737_v22 = vld [vmem:[#allocation2 + $0xd8] sm:$0xff]  ;;  %v738_v24 = vld [vmem:[#allocation2 + $0xe0] sm:$0xff]  ;;  %v739_v25 = vld [vmem:[#allocation2 + $0xe8] sm:$0xff]  ;;  %v838_v38 = vsel %vm837_vm3, %v836_v35, %v819_v34  ;;  %vm841_vm5 = vcmask 1044480   ;;  %v828_v53 = vrot.slane %v1992_v3, 2 }
 0x73e   :  { %v1467_v23 = vpack.c.bf16 %v737_v22, %v736_v21  ;;  %v1470_v26 = vpack.c.bf16 %v739_v25, %v738_v24  ;;  %v740_v28 = vld [vmem:[#allocation2 + $0xf0] sm:$0xff]  ;;  %v741_v29 = vld [vmem:[#allocation2 + $0xf8] sm:$0xff]  ;;  %v840_v39 = vsel %vm839_vm4, %v838_v38, %v822_v36  ;;  %vm843_vm6 = vcmask 1045504  }
 0x73f   :  { %v1473_v30 = vpack.c.bf16 %v741_v29, %v740_v28  ;;  %vm845_vm7 = vcmask 1046528  }
 0x740   :  { %1456 = vmatpush3.bf16.msra.mxu1 %v1455_v11 }
 0x741   :  { %1457 = vmatprep.subr.bf16.mxu1 %v1695_v1 }
 0x744   :  { %1459 = vmatpush3.bf16.msra.mxu1 %v1458_v14 }
 0x745   :  { %1460 = vmatprep.subr.bf16.mxu1 %v1695_v1 }
 0x748   :  { %1462 = vmatpush3.bf16.msra.mxu1 %v1461_v18 }
 0x749   :  { %1463 = vmatprep.subr.bf16.mxu1 %v1695_v1 }
 0x74c   :  { %1465 = vmatpush3.bf16.msra.mxu1 %v1464_v20 }
 0x74d   :  { %1466 = vmatprep.subr.bf16.mxu1 %v1695_v1 }
 0x750   :  { %1468 = vmatpush3.bf16.msra.mxu1 %v1467_v23 }
 0x751   :  { %1469 = vmatprep.subr.bf16.mxu1 %v1695_v1 }
 0x754   :  { %1471 = vmatpush3.bf16.msra.mxu1 %v1470_v26 }
 0x755   :  { %1472 = vmatprep.subr.bf16.mxu1 %v1695_v1  ;;  %v825_v1 = vrot.slane %v1964_v37, 3 }
 0x757   :  { %v842_v40 = vsel %vm841_vm5, %v840_v39, %v825_v1 }
 0x758   :  { %1474 = vmatpush3.bf16.msra.mxu1 %v1473_v30  ;;  %v844_v41 = vsel %vm843_vm6, %v842_v40, %v828_v53 }
 0x75b   :  { %1281 = vmatmul.mubr.f32.vlgmr.msra.gmra.mrb[6].mxu1 %v1992_v3 }
 0x82e   :  { %v808_v17 = vpop.f32.mrb[6].mxu1 }
 0x82f   :  { %v831_v27 = vrot.slane %v808_v17, 1  ;;  %v1282_v42 = vpop.f32.mrb[7].mxu1 }
 0x831   :  { %v846_v44 = vsel %vm845_vm7, %v844_v41, %v831_v27 }
 0x832   :  { %847 = vst [vmem:[%s2017_s2] sm:$0xff] %v846_v44 }
 0x833   :  { %852 = vsyncmov [#allocation3] }
 0x836   :  { %s853_s30 = vpop.sfrf %852 }
 0x837   :  { %p865_p7 = scmp.ne.s32.totalorder %s853_s30, 0 }
 0x839   :  { %857 = shalt.err (%p865_p7)  }
 0x83a   :  { %859 = vsyncmov [#allocation3 + $0x1] }
 0x83d   :  { %s860_s9 = vpop.sfrf %859 }
 0x83e   :  { %p866_p12 = scmp.ne.s32.totalorder %s860_s9, 0 }
 0x840   :  { %864 = shalt.err (%p866_p12)  }

</bundles_post_ra>
